<compile_context>
chip_gen: v7x
topology: tpu7x:2x2x1
jax: 0.10.0
libtpu: 0.0.40
codegen_flags: <defaults>
</compile_context>

<pallas_src>
import functools

import jax
import jax.numpy as jnp
import numpy as np
from jax.experimental import pallas as pl
from jax.experimental.pallas import tpu as pltpu


# ---------------------------------------------------------------------------
# Fused kernel: whole C3 block for one image, on a lane-dense (C, H*W) tile.
# ---------------------------------------------------------------------------
def _c3_fused_kernel(x_ref, a1_ref, c1_ref, k3_ref, mask_ref, a2_ref, c2_ref,
                     o_ref, *, W):
    x = x_ref[0]                       # (C, HW): channels on sublanes, spatial on lanes
    HW = x.shape[1]

    # conv1 = dw1x1 + BN + pw1x1 + BN, folded into a single affine map.
    h1 = jnp.dot(a1_ref[...], x, preferred_element_type=jnp.float32) + c1_ref[...]

    # conv2 depthwise 3x3 (stride 1, pad 1): tap (dh, dw) is a circular rotation of
    # the flat spatial axis by dh*W+dw, corrected at the image border by a 0/1 mask.
    # NOTE: pltpu.roll(h1, shift, axis=1) is the XLU-native form of this rotation.
    acc = k3_ref[:, 4:5] * h1          # centre tap (dh=0, dw=0): no shift, no mask
    t = 0
    for dh in (-1, 0, 1):
        for dw in (-1, 0, 1):
            if dh == 0 and dw == 0:
                t += 1
                continue
            s = (dh * W + dw) % HW
            rolled = jnp.concatenate([h1[:, s:], h1[:, :s]], axis=1)  # h1[:, (j+s)%HW]
            acc = acc + k3_ref[:, t:t + 1] * (rolled * mask_ref[t:t + 1, :])
            t += 1

    # BN + conv2-pw (C->2C) + BN + conv3 (2C->C) + BN, folded into one CxC affine map.
    tail = jnp.dot(a2_ref[...], acc, preferred_element_type=jnp.float32) + c2_ref[...]

    o_ref[0] = x + tail                # residual shortcut (in_channels == out_channels)


# ---------------------------------------------------------------------------
# Host-side helpers
# ---------------------------------------------------------------------------
def _boundary_masks(H, W):
    """(9, H*W) 0/1 masks marking taps that fall inside the image (pad=1 zeros)."""
    hw = np.arange(H * W)
    h, w = hw // W, hw % W
    masks = []
    for dh in (-1, 0, 1):
        for dw in (-1, 0, 1):
            ok = (h + dh >= 0) & (h + dh < H) & (w + dw >= 0) & (w + dw < W)
            masks.append(ok.astype(np.float32))
    return jnp.asarray(np.stack(masks))


def c3_pallas(x_nchw, fp):
    N, C, H, W = x_nchw.shape
    assert fp['A1'].shape == (C, C), "shortcut path requires in_channels == out_channels"
    HW = H * W
    x_flat = x_nchw.reshape(N, C, HW).astype(jnp.float32)  # NCHW is already lane-dense
    masks = _boundary_masks(H, W)

    kernel = functools.partial(_c3_fused_kernel, W=W)
    out_flat = pl.pallas_call(
        kernel,
        out_shape=jax.ShapeDtypeStruct((N, C, HW), jnp.float32),
        grid=(N,),
        in_specs=[
            pl.BlockSpec((1, C, HW), lambda b: (b, 0, 0)),  # x: one image per step
            pl.BlockSpec((C, C), lambda b: (0, 0)),         # A1 (folded conv1)
            pl.BlockSpec((C, 1), lambda b: (0, 0)),         # c1
            pl.BlockSpec((C, 9), lambda b: (0, 0)),         # depthwise 3x3 taps
            pl.BlockSpec((9, HW), lambda b: (0, 0)),        # boundary masks
            pl.BlockSpec((C, C), lambda b: (0, 0)),         # A2 (folded conv2-pw+conv3)
            pl.BlockSpec((C, 1), lambda b: (0, 0)),         # c2
        ],
        out_specs=pl.BlockSpec((1, C, HW), lambda b: (b, 0, 0)),
        compiler_params=pltpu.CompilerParams(dimension_semantics=("parallel",)),
    )(x_flat, fp['A1'], fp['c1'], fp['k3'], masks, fp['A2'], fp['c2'])

    return out_flat.reshape(N, C, H, W)


# ---------------------------------------------------------------------------
# Parameter construction (deterministic, synthetic) and algebraic folding
# ---------------------------------------------------------------------------
def init_params(key, c_in, c_out):
    def nk():
        nonlocal key
        key, sub = jax.random.split(key)
        return sub

    def bn_params(c):
        gamma = jax.random.uniform(nk(), (c,), minval=0.5, maxval=1.5)
        beta = jax.random.normal(nk(), (c,)) * 0.1
        mean = jax.random.normal(nk(), (c,)) * 0.1
        var = jax.random.uniform(nk(), (c,), minval=0.5, maxval=1.5)
        return (gamma, beta, mean, var)

    p = {}
    # conv1: Conv2d(cin,cin,1,groups=cin) + BN + Conv2d(cin,cout,1) + BN
    p['w1_dw'] = jax.random.normal(nk(), (c_in,)) * 0.5
    p['bn1a'] = bn_params(c_in)
    p['w1_pw'] = jax.random.normal(nk(), (c_out, c_in)) * 0.2
    p['bn1b'] = bn_params(c_out)
    # conv2: Conv2d(cout,cout,3,p=1,groups=cout) + BN + Conv2d(cout,2cout,1) + BN
    p['w2_dw'] = jax.random.normal(nk(), (c_out, 3, 3)) * 0.2
    p['bn2a'] = bn_params(c_out)
    p['w2_pw'] = jax.random.normal(nk(), (2 * c_out, c_out)) * 0.2
    p['bn2b'] = bn_params(2 * c_out)
    # conv3: Conv2d(2cout,cout,1) + BN
    p['w3_pw'] = jax.random.normal(nk(), (c_out, 2 * c_out)) * 0.2
    p['bn3'] = bn_params(c_out)
    return p


def fold_params(p, eps=1e-5):
    """Fold eval-mode BNs + 1x1 convs into two (C,C) affine maps (valid since act=None)."""
    hp = "highest"

    def bn_fold(bn):
        g, b, m, v = bn
        s = g / jnp.sqrt(v + eps)
        return s, b - m * s

    s1a, t1a = bn_fold(p['bn1a'])
    s1b, t1b = bn_fold(p['bn1b'])
    s2a, t2a = bn_fold(p['bn2a'])
    s2b, t2b = bn_fold(p['bn2b'])
    s3, t3 = bn_fold(p['bn3'])

    # conv1: h1 = A1 @ x + c1 (channels-first column vectors)
    A1 = (s1b[:, None] * p['w1_pw']) * (s1a * p['w1_dw'])[None, :]
    c1 = s1b * jnp.matmul(p['w1_pw'], t1a, precision=hp) + t1b

    # BN2a + conv2-pw + BN2b + conv3 + BN3: out = A2 @ dw3x3(h1) + c2
    A2 = jnp.matmul(s3[:, None] * p['w3_pw'],
                    (s2b[:, None] * p['w2_pw']) * s2a[None, :],
                    precision=hp)
    c2 = s3 * jnp.matmul(p['w3_pw'],
                         s2b * jnp.matmul(p['w2_pw'], t2a, precision=hp) + t2b,
                         precision=hp) + t3

    k3 = p['w2_dw'].reshape(-1, 9)    # (C, 9), tap order t = (dh+1)*3 + (dw+1)

    return {
        'A1': A1.astype(jnp.float32),
        'c1': c1[:, None].astype(jnp.float32),
        'k3': k3.astype(jnp.float32),
        'A2': A2.astype(jnp.float32),
        'c2': c2[:, None].astype(jnp.float32),
    }


# ---------------------------------------------------------------------------
# Pure-JAX unfolded reference (eval-mode BN), NCHW -- validates the folding too.
# ---------------------------------------------------------------------------
def c3_reference(x, p, eps=1e-5):
    N, C, H, W = x.shape
    hp = "highest"

    def bn(y, bn_p):
        g, b, m, v = bn_p
        s = g / jnp.sqrt(v + eps)
        return y * s[None, :, None, None] + (b - m * s)[None, :, None, None]

    # conv1: dw 1x1 + BN + pw 1x1 + BN
    y = x * p['w1_dw'][None, :, None, None]
    y = bn(y, p['bn1a'])
    y = jnp.einsum('oc,nchw->nohw', p['w1_pw'], y, precision=hp)
    h1 = bn(y, p['bn1b'])

    # conv2: dw 3x3 (pad 1) + BN + pw 1x1 -> 2C + BN
    h1p = jnp.pad(h1, ((0, 0), (0, 0), (1, 1), (1, 1)))
    acc = jnp.zeros_like(h1)
    for kh in range(3):
        for kw in range(3):
            acc = acc + h1p[:, :, kh:kh + H, kw:kw + W] * p['w2_dw'][None, :, kh, kw, None, None]
    y = bn(acc, p['bn2a'])
    y = jnp.einsum('oc,nchw->nohw', p['w2_pw'], y, precision=hp)
    y = bn(y, p['bn2b'])

    # conv3: pw 1x1 2C -> C + BN
    y = jnp.einsum('oc,nchw->nohw', p['w3_pw'], y, precision=hp)
    y = bn(y, p['bn3'])

    return x + y                       # shortcut


if __name__ == "__main__":
    key = jax.random.PRNGKey(0)
    kx, kp = jax.random.split(key)

    N, C, H, W = 2, 8, 16, 16          # in_channels == out_channels -> shortcut active
    x = jax.random.normal(kx, (N, C, H, W), dtype=jnp.float32)

    raw = init_params(kp, C, C)
    folded = fold_params(raw)

    out = c3_pallas(x, folded)
    out = jax.block_until_ready(out)

    ref = c3_reference(x, raw)
    # Tolerance covers MXU bf16-pass rounding of the in-kernel f32 matmuls under
    # default matmul precision; structural bugs would show up as O(0.1-1) errors.
    np.testing.assert_allclose(np.asarray(out), np.asarray(ref), rtol=5e-3, atol=5e-3)

    print("KERNEL_OK")
</pallas_src>

<mosaic_0001>
module attributes {stable_mosaic.version = 11 : i64} {
  func.func @_c3_fused_kernel(%arg0: i32, %arg1: memref<1x8x256xf32, #tpu.memory_space<vmem>>, %arg2: memref<8x8xf32, #tpu.memory_space<vmem>>, %arg3: memref<8x1xf32, #tpu.memory_space<vmem>>, %arg4: memref<8x9xf32, #tpu.memory_space<vmem>>, %arg5: memref<9x256xf32, #tpu.memory_space<vmem>>, %arg6: memref<8x8xf32, #tpu.memory_space<vmem>>, %arg7: memref<8x1xf32, #tpu.memory_space<vmem>>, %arg8: memref<1x8x256xf32, #tpu.memory_space<vmem>>) attributes {dimension_semantics = [#tpu.dimension_semantics<parallel>], iteration_bounds = array<i64: 2>, scalar_prefetch = 0 : i64, scratch_operands = 0 : i64, tpu.core_type = #tpu.core_type<tc>, window_params = [{transform_indices = @transform_0, window_bounds = array<i64: 1, 8, 256>}, {pipeline_mode = #tpu.pipeline_mode<synchronous>, transform_indices = @transform_1, window_bounds = array<i64: 8, 8>}, {pipeline_mode = #tpu.pipeline_mode<synchronous>, transform_indices = @transform_2, window_bounds = array<i64: 8, 1>}, {pipeline_mode = #tpu.pipeline_mode<synchronous>, transform_indices = @transform_3, window_bounds = array<i64: 8, 9>}, {pipeline_mode = #tpu.pipeline_mode<synchronous>, transform_indices = @transform_4, window_bounds = array<i64: 9, 256>}, {pipeline_mode = #tpu.pipeline_mode<synchronous>, transform_indices = @transform_5, window_bounds = array<i64: 8, 8>}, {pipeline_mode = #tpu.pipeline_mode<synchronous>, transform_indices = @transform_6, window_bounds = array<i64: 8, 1>}, {transform_indices = @transform_7, window_bounds = array<i64: 1, 8, 256>}]} {
    %c0 = arith.constant 0 : index
    %c0_0 = arith.constant 0 : index
    %c0_1 = arith.constant 0 : index
    %0 = vector.load %arg1[%c0, %c0_0, %c0_1] : memref<1x8x256xf32, #tpu.memory_space<vmem>>, vector<1x8x256xf32>
    %1 = vector.shape_cast %0 : vector<1x8x256xf32> to vector<8x256xf32>
    %c0_2 = arith.constant 0 : index
    %c0_3 = arith.constant 0 : index
    %2 = vector.load %arg2[%c0_2, %c0_3] : memref<8x8xf32, #tpu.memory_space<vmem>>, vector<8x8xf32>
    %cst = arith.constant dense<0.000000e+00> : vector<8x256xf32>
    %3 = tpu.matmul %2, %1, %cst {dimension_numbers = #tpu.dot_dimension_numbers<[1], [0], [0], [1], [0, 0, 1, 1], [], []>} : vector<8x8xf32>, vector<8x256xf32>, vector<8x256xf32> -> vector<8x256xf32>
    %c0_4 = arith.constant 0 : index
    %c0_5 = arith.constant 0 : index
    %4 = vector.load %arg3[%c0_4, %c0_5] : memref<8x1xf32, #tpu.memory_space<vmem>>, vector<8x1xf32>
    %5 = vector.broadcast %4 : vector<8x1xf32> to vector<8x256xf32>
    %6 = arith.addf %3, %5 : vector<8x256xf32>
    %c0_6 = arith.constant 0 : index
    %c4 = arith.constant 4 : index
    %7 = vector.load %arg4[%c0_6, %c4] : memref<8x9xf32, #tpu.memory_space<vmem>>, vector<8x1xf32>
    %8 = vector.broadcast %7 : vector<8x1xf32> to vector<8x256xf32>
    %9 = arith.mulf %8, %6 : vector<8x256xf32>
    %10 = vector.extract_strided_slice %6 {offsets = [0, 239], sizes = [8, 17], strides = [1, 1]} : vector<8x256xf32> to vector<8x17xf32>
    %11 = vector.extract_strided_slice %6 {offsets = [0, 0], sizes = [8, 239], strides = [1, 1]} : vector<8x256xf32> to vector<8x239xf32>
    %12 = tpu.concatenate %10, %11 in 1 : vector<8x17xf32>, vector<8x239xf32> -> vector<8x256xf32>
    %c0_7 = arith.constant 0 : index
    %c0_8 = arith.constant 0 : index
    %13 = vector.load %arg4[%c0_7, %c0_8] : memref<8x9xf32, #tpu.memory_space<vmem>>, vector<8x1xf32>
    %c0_9 = arith.constant 0 : index
    %c0_10 = arith.constant 0 : index
    %14 = vector.load %arg5[%c0_9, %c0_10] : memref<9x256xf32, #tpu.memory_space<vmem>>, vector<1x256xf32>
    %15 = vector.broadcast %14 : vector<1x256xf32> to vector<8x256xf32>
    %16 = arith.mulf %12, %15 : vector<8x256xf32>
    %17 = vector.broadcast %13 : vector<8x1xf32> to vector<8x256xf32>
    %18 = arith.mulf %17, %16 : vector<8x256xf32>
    %19 = arith.addf %9, %18 : vector<8x256xf32>
    %20 = vector.extract_strided_slice %6 {offsets = [0, 240], sizes = [8, 16], strides = [1, 1]} : vector<8x256xf32> to vector<8x16xf32>
    %21 = vector.extract_strided_slice %6 {offsets = [0, 0], sizes = [8, 240], strides = [1, 1]} : vector<8x256xf32> to vector<8x240xf32>
    %22 = tpu.concatenate %20, %21 in 1 : vector<8x16xf32>, vector<8x240xf32> -> vector<8x256xf32>
    %c0_11 = arith.constant 0 : index
    %c1 = arith.constant 1 : index
    %23 = vector.load %arg4[%c0_11, %c1] : memref<8x9xf32, #tpu.memory_space<vmem>>, vector<8x1xf32>
    %c1_12 = arith.constant 1 : index
    %c0_13 = arith.constant 0 : index
    %24 = vector.load %arg5[%c1_12, %c0_13] : memref<9x256xf32, #tpu.memory_space<vmem>>, vector<1x256xf32>
    %25 = vector.broadcast %24 : vector<1x256xf32> to vector<8x256xf32>
    %26 = arith.mulf %22, %25 : vector<8x256xf32>
    %27 = vector.broadcast %23 : vector<8x1xf32> to vector<8x256xf32>
    %28 = arith.mulf %27, %26 : vector<8x256xf32>
    %29 = arith.addf %19, %28 : vector<8x256xf32>
    %30 = vector.extract_strided_slice %6 {offsets = [0, 241], sizes = [8, 15], strides = [1, 1]} : vector<8x256xf32> to vector<8x15xf32>
    %31 = vector.extract_strided_slice %6 {offsets = [0, 0], sizes = [8, 241], strides = [1, 1]} : vector<8x256xf32> to vector<8x241xf32>
    %32 = tpu.concatenate %30, %31 in 1 : vector<8x15xf32>, vector<8x241xf32> -> vector<8x256xf32>
    %c0_14 = arith.constant 0 : index
    %c2 = arith.constant 2 : index
    %33 = vector.load %arg4[%c0_14, %c2] : memref<8x9xf32, #tpu.memory_space<vmem>>, vector<8x1xf32>
    %c2_15 = arith.constant 2 : index
    %c0_16 = arith.constant 0 : index
    %34 = vector.load %arg5[%c2_15, %c0_16] : memref<9x256xf32, #tpu.memory_space<vmem>>, vector<1x256xf32>
    %35 = vector.broadcast %34 : vector<1x256xf32> to vector<8x256xf32>
    %36 = arith.mulf %32, %35 : vector<8x256xf32>
    %37 = vector.broadcast %33 : vector<8x1xf32> to vector<8x256xf32>
    %38 = arith.mulf %37, %36 : vector<8x256xf32>
    %39 = arith.addf %29, %38 : vector<8x256xf32>
    %40 = vector.extract_strided_slice %6 {offsets = [0, 255], sizes = [8, 1], strides = [1, 1]} : vector<8x256xf32> to vector<8x1xf32>
    %41 = vector.extract_strided_slice %6 {offsets = [0, 0], sizes = [8, 255], strides = [1, 1]} : vector<8x256xf32> to vector<8x255xf32>
    %42 = tpu.concatenate %40, %41 in 1 : vector<8x1xf32>, vector<8x255xf32> -> vector<8x256xf32>
    %c0_17 = arith.constant 0 : index
    %c3 = arith.constant 3 : index
    %43 = vector.load %arg4[%c0_17, %c3] : memref<8x9xf32, #tpu.memory_space<vmem>>, vector<8x1xf32>
    %c3_18 = arith.constant 3 : index
    %c0_19 = arith.constant 0 : index
    %44 = vector.load %arg5[%c3_18, %c0_19] : memref<9x256xf32, #tpu.memory_space<vmem>>, vector<1x256xf32>
    %45 = vector.broadcast %44 : vector<1x256xf32> to vector<8x256xf32>
    %46 = arith.mulf %42, %45 : vector<8x256xf32>
    %47 = vector.broadcast %43 : vector<8x1xf32> to vector<8x256xf32>
    %48 = arith.mulf %47, %46 : vector<8x256xf32>
    %49 = arith.addf %39, %48 : vector<8x256xf32>
    %50 = vector.extract_strided_slice %6 {offsets = [0, 1], sizes = [8, 255], strides = [1, 1]} : vector<8x256xf32> to vector<8x255xf32>
    %51 = vector.extract_strided_slice %6 {offsets = [0, 0], sizes = [8, 1], strides = [1, 1]} : vector<8x256xf32> to vector<8x1xf32>
    %52 = tpu.concatenate %50, %51 in 1 : vector<8x255xf32>, vector<8x1xf32> -> vector<8x256xf32>
    %c0_20 = arith.constant 0 : index
    %c5 = arith.constant 5 : index
    %53 = vector.load %arg4[%c0_20, %c5] : memref<8x9xf32, #tpu.memory_space<vmem>>, vector<8x1xf32>
    %c5_21 = arith.constant 5 : index
    %c0_22 = arith.constant 0 : index
    %54 = vector.load %arg5[%c5_21, %c0_22] : memref<9x256xf32, #tpu.memory_space<vmem>>, vector<1x256xf32>
    %55 = vector.broadcast %54 : vector<1x256xf32> to vector<8x256xf32>
    %56 = arith.mulf %52, %55 : vector<8x256xf32>
    %57 = vector.broadcast %53 : vector<8x1xf32> to vector<8x256xf32>
    %58 = arith.mulf %57, %56 : vector<8x256xf32>
    %59 = arith.addf %49, %58 : vector<8x256xf32>
    %60 = vector.extract_strided_slice %6 {offsets = [0, 15], sizes = [8, 241], strides = [1, 1]} : vector<8x256xf32> to vector<8x241xf32>
    %61 = vector.extract_strided_slice %6 {offsets = [0, 0], sizes = [8, 15], strides = [1, 1]} : vector<8x256xf32> to vector<8x15xf32>
    %62 = tpu.concatenate %60, %61 in 1 : vector<8x241xf32>, vector<8x15xf32> -> vector<8x256xf32>
    %c0_23 = arith.constant 0 : index
    %c6 = arith.constant 6 : index
    %63 = vector.load %arg4[%c0_23, %c6] : memref<8x9xf32, #tpu.memory_space<vmem>>, vector<8x1xf32>
    %c6_24 = arith.constant 6 : index
    %c0_25 = arith.constant 0 : index
    %64 = vector.load %arg5[%c6_24, %c0_25] : memref<9x256xf32, #tpu.memory_space<vmem>>, vector<1x256xf32>
    %65 = vector.broadcast %64 : vector<1x256xf32> to vector<8x256xf32>
    %66 = arith.mulf %62, %65 : vector<8x256xf32>
    %67 = vector.broadcast %63 : vector<8x1xf32> to vector<8x256xf32>
    %68 = arith.mulf %67, %66 : vector<8x256xf32>
    %69 = arith.addf %59, %68 : vector<8x256xf32>
    %70 = vector.extract_strided_slice %6 {offsets = [0, 16], sizes = [8, 240], strides = [1, 1]} : vector<8x256xf32> to vector<8x240xf32>
    %71 = vector.extract_strided_slice %6 {offsets = [0, 0], sizes = [8, 16], strides = [1, 1]} : vector<8x256xf32> to vector<8x16xf32>
    %72 = tpu.concatenate %70, %71 in 1 : vector<8x240xf32>, vector<8x16xf32> -> vector<8x256xf32>
    %c0_26 = arith.constant 0 : index
    %c7 = arith.constant 7 : index
    %73 = vector.load %arg4[%c0_26, %c7] : memref<8x9xf32, #tpu.memory_space<vmem>>, vector<8x1xf32>
    %c7_27 = arith.constant 7 : index
    %c0_28 = arith.constant 0 : index
    %74 = vector.load %arg5[%c7_27, %c0_28] : memref<9x256xf32, #tpu.memory_space<vmem>>, vector<1x256xf32>
    %75 = vector.broadcast %74 : vector<1x256xf32> to vector<8x256xf32>
    %76 = arith.mulf %72, %75 : vector<8x256xf32>
    %77 = vector.broadcast %73 : vector<8x1xf32> to vector<8x256xf32>
    %78 = arith.mulf %77, %76 : vector<8x256xf32>
    %79 = arith.addf %69, %78 : vector<8x256xf32>
    %80 = vector.extract_strided_slice %6 {offsets = [0, 17], sizes = [8, 239], strides = [1, 1]} : vector<8x256xf32> to vector<8x239xf32>
    %81 = vector.extract_strided_slice %6 {offsets = [0, 0], sizes = [8, 17], strides = [1, 1]} : vector<8x256xf32> to vector<8x17xf32>
    %82 = tpu.concatenate %80, %81 in 1 : vector<8x239xf32>, vector<8x17xf32> -> vector<8x256xf32>
    %c0_29 = arith.constant 0 : index
    %c8 = arith.constant 8 : index
    %83 = vector.load %arg4[%c0_29, %c8] : memref<8x9xf32, #tpu.memory_space<vmem>>, vector<8x1xf32>
    %c8_30 = arith.constant 8 : index
    %c0_31 = arith.constant 0 : index
    %84 = vector.load %arg5[%c8_30, %c0_31] : memref<9x256xf32, #tpu.memory_space<vmem>>, vector<1x256xf32>
    %85 = vector.broadcast %84 : vector<1x256xf32> to vector<8x256xf32>
    %86 = arith.mulf %82, %85 : vector<8x256xf32>
    %87 = vector.broadcast %83 : vector<8x1xf32> to vector<8x256xf32>
    %88 = arith.mulf %87, %86 : vector<8x256xf32>
    %89 = arith.addf %79, %88 : vector<8x256xf32>
    %c0_32 = arith.constant 0 : index
    %c0_33 = arith.constant 0 : index
    %90 = vector.load %arg6[%c0_32, %c0_33] : memref<8x8xf32, #tpu.memory_space<vmem>>, vector<8x8xf32>
    %cst_34 = arith.constant dense<0.000000e+00> : vector<8x256xf32>
    %91 = tpu.matmul %90, %89, %cst_34 {dimension_numbers = #tpu.dot_dimension_numbers<[1], [0], [0], [1], [0, 0, 1, 1], [], []>} : vector<8x8xf32>, vector<8x256xf32>, vector<8x256xf32> -> vector<8x256xf32>
    %c0_35 = arith.constant 0 : index
    %c0_36 = arith.constant 0 : index
    %92 = vector.load %arg7[%c0_35, %c0_36] : memref<8x1xf32, #tpu.memory_space<vmem>>, vector<8x1xf32>
    %93 = vector.broadcast %92 : vector<8x1xf32> to vector<8x256xf32>
    %94 = arith.addf %91, %93 : vector<8x256xf32>
    %95 = arith.addf %1, %94 : vector<8x256xf32>
    %c0_37 = arith.constant 0 : index
    %c0_38 = arith.constant 0 : index
    %c0_39 = arith.constant 0 : index
    %96 = vector.load %arg8[%c0_37, %c0_38, %c0_39] : memref<1x8x256xf32, #tpu.memory_space<vmem>>, vector<1x8x256xf32>
    %97 = vector.shape_cast %96 : vector<1x8x256xf32> to vector<8x256xf32>
    %98 = vector.shape_cast %95 : vector<8x256xf32> to vector<1x8x256xf32>
    tpu.vector_store %arg8[%c0_37, %c0_38, %c0_39], %98 {strides = array<i32>} : memref<1x8x256xf32, #tpu.memory_space<vmem>>, vector<1x8x256xf32>,
    return
  }
  func.func @transform_0(%arg0: i32) -> (i32, i32, i32) {
    %c0_i32 = arith.constant 0 : i32
    %c0_i32_0 = arith.constant 0 : i32
    %c0_i32_1 = arith.constant 0 : i32
    return %arg0, %c0_i32, %c0_i32_0 : i32, i32, i32
  }
  func.func @transform_1(%arg0: i32) -> (i32, i32) {
    %c0_i32 = arith.constant 0 : i32
    %c0_i32_0 = arith.constant 0 : i32
    %c0_i32_1 = arith.constant 0 : i32
    return %c0_i32, %c0_i32_0 : i32, i32
  }
  func.func @transform_2(%arg0: i32) -> (i32, i32) {
    %c0_i32 = arith.constant 0 : i32
    %c0_i32_0 = arith.constant 0 : i32
    %c0_i32_1 = arith.constant 0 : i32
    return %c0_i32, %c0_i32_0 : i32, i32
  }
  func.func @transform_3(%arg0: i32) -> (i32, i32) {
    %c0_i32 = arith.constant 0 : i32
    %c0_i32_0 = arith.constant 0 : i32
    %c0_i32_1 = arith.constant 0 : i32
    return %c0_i32, %c0_i32_0 : i32, i32
  }
  func.func @transform_4(%arg0: i32) -> (i32, i32) {
    %c0_i32 = arith.constant 0 : i32
    %c0_i32_0 = arith.constant 0 : i32
    %c0_i32_1 = arith.constant 0 : i32
    return %c0_i32, %c0_i32_0 : i32, i32
  }
  func.func @transform_5(%arg0: i32) -> (i32, i32) {
    %c0_i32 = arith.constant 0 : i32
    %c0_i32_0 = arith.constant 0 : i32
    %c0_i32_1 = arith.constant 0 : i32
    return %c0_i32, %c0_i32_0 : i32, i32
  }
  func.func @transform_6(%arg0: i32) -> (i32, i32) {
    %c0_i32 = arith.constant 0 : i32
    %c0_i32_0 = arith.constant 0 : i32
    %c0_i32_1 = arith.constant 0 : i32
    return %c0_i32, %c0_i32_0 : i32, i32
  }
  func.func @transform_7(%arg0: i32) -> (i32, i32, i32) {
    %c0_i32 = arith.constant 0 : i32
    %c0_i32_0 = arith.constant 0 : i32
    %c0_i32_1 = arith.constant 0 : i32
    return %arg0, %c0_i32, %c0_i32_0 : i32, i32, i32
  }
}

</mosaic_0001>

<bundles_post_ra>
// kernel: tpu_custom_call.1
= control target key start
LH: loop header
LB: loop body
LE: loop exit
PB: predicated region body
PF: predicated region fallthrough
CT: control target
= control target key end

     0   :  { %12 = vsyncpa [#allocation3], 0  ;;  %s1656_s0 = inlined_call_operand.hbm [shape: f32[2,8,256], index: 0, kind: input, shape index: {}]   ;;  %s1657_s1 = inlined_call_operand.hbm [shape: f32[8,8], index: 1, kind: input, shape index: {}]   ;;  %s1658_s2 = inlined_call_operand.vmem [shape: f32[8,1], index: 2, kind: input, shape index: {}]   ;;  %s1659_s3 = inlined_call_operand.hbm [shape: f32[8,9], index: 3, kind: input, shape index: {}]   ;;  %s1660_s4 = inlined_call_operand.vmem [shape: f32[9,256], index: 4, kind: input, shape index: {}]   ;;  %s1661_s5 = inlined_call_operand.hbm [shape: f32[8,8], index: 5, kind: input, shape index: {}]   ;;  %s1662_s6 = inlined_call_operand.vmem [shape: f32[8,1], index: 6, kind: input, shape index: {}]   ;;  %s1663_s7 = inlined_call_operand.hbm [shape: f32[2,8,256], index: 7, kind: output, shape index: {}]  }
   0x1   :  { %14 = vsyncpa [#allocation3 + $0x1], 0 }
   0x2   :  { %15 = vsyncpa [#allocation6], 0 }
   0x3   :  { %16 = vsyncpa [#allocation9], 0 }
   0x4   :  { %17 = vsyncpa [#allocation4], 0 }
   0x5   :  { %19 = vsyncpa [#allocation4 + $0x1], 0  ;;  %s1279_s24 = smov 0   ;;  %s1281_s25 = smov 0  }
   0x6   :  { %s1283_s26 = smov 0   ;;  %s1285_s27 = smov 0  }
   0x7 LB: > { %s1300_s28 = sadd.s32 4294967295, %s1214_s27   ;;  %s889_s29 = sadd.s32 4294967294, %s1214_s27   ;;  %s1214_s27 = sphi %s1285_s27, %s1686_s27   ;;  %s1210_s26 = sphi %s1283_s26, %s1685_s26   ;;  %s1206_s25 = sphi %s1281_s25, %s1684_s25   ;;  %s1202_s24 = sphi %s1279_s24, %s1683_s24  }
   0x8   : > { %p45_p0 = scmp.ne.s32.totalorder %s1206_s25, %s1202_s24  ;;  %p1664_p1 = scmp.eq.s32.totalorder %s1300_s28, 0 }
   0x9   : > { %p201_p3 = scmp.eq.s32.totalorder %s889_s29, 1  ;;  %p890_p5 = scmp.ge.s32.totalorder %s1214_s27, 1 }
   0xa   : > { %p1309_p4 = por %p1664_p1, %p45_p0  ;;  %p208_p7 = scmp.lt.s32.totalorder %s1214_s27, 3 }
   0xb   : > { %p1314_p6 = por %p201_p3, %p45_p0  ;;  %s1216_s10 = smov [#allocation5]  }
   0xc   : > { %s1667_s30 = scalar_select %p1309_p4, 1, 0 }
   0xd   : > { %s1668_s8 = scalar_select %p1314_p6, 1, 0 }
   0xe   : > { %p1319_p8 = pnand %p890_p5, %p208_p7  ;;  %s221_s11 = sshll.u32 %s1216_s10, 4  ;;  %s222_s11 = int_to_ptr.vmem [resolvable:$true] %s221_s11 }
   0xf   : > { %s1217_s12 = smov [#allocation7]   ;;  %s1218_s15 = smov [#allocation8]  }
  0x10   : > { %s1669_s9 = scalar_select %p1319_p8, 1, 0 }
  0x11   : > { %p936_p10 = pneg %p1319_p8  ;;  %s235_s13 = sshll.u32 %s1217_s12, 4  ;;  %s1332_s13 = int_to_ptr.vmem [resolvable:$true] %s235_s13 }
  0x12   : > { %s249_s16 = sshll.u32 %s1218_s15, 4  ;;  %s1026_s19 = scalar_lea.hbm %s1657_s1, 128  ;;  %s1334_s16 = int_to_ptr.vmem [resolvable:$true] %s249_s16 }
  0x13   : > { %p1328_p11 = pnand %p936_p10, %p1664_p1  ;;  %p1027_p12 = scmp.ne.s32.totalorder %s1657_s1, %s1026_s19 }
  0x14   : > { %p1033_p5 = scmp.lt.u32.totalorder %s1026_s19, %s1657_s1 }
  0x15   : > { %p1344_p13 = pneg %p1328_p11 }
  0x17   : > { %p1029_p0 = pnand %p1344_p13, %p1027_p12 }
  0x19   : > { %p1030_p3 = pneg %p1029_p0 }
  0x1b   : > { %p1035_p7 = pnand %p1033_p5, %p1030_p3 }
  0x1d   : > { %1038 = shalt.err (!%p1035_p7)
}
  0x1e   : > { %s1039_s10 = scalar_lea.vmem %s222_s11, 128  ;;  %p1047_p2 = scmp.lt.s32.totalorder %s222_s11, %s222_s11 }
  0x1f   : > { %p1040_p10 = scmp.ne.s32.totalorder %s222_s11, %s1039_s10  ;;  %p1048_p6 = scmp.lt.s32.totalorder %s1039_s10, %s1039_s10 }
  0x21   : > { %p1042_p9 = pnand %p1040_p10, %p1344_p13  ;;  %p1049_p4 = por %p1048_p6, %p1047_p2 }
  0x23   : > { %p1043_p1 = pneg %p1042_p9 }
  0x25   : > { %p1050_p8 = pnand %p1049_p4, %p1043_p1 }
  0x27   : > { %1053 = shalt.err (!%p1050_p8)
}
  0x28   : > { %939 = dma.hbm_to_vmem [thread:$0]  (!%p1328_p11), %s1657_s1, 128, %s222_s11, [#allocation6]  }
  0x29   : > { %s1054_s19 = scalar_lea.hbm %s1659_s3, 128 }
  0x2a   : > { %p1055_p9 = scmp.ne.s32.totalorder %s1659_s3, %s1054_s19  ;;  %p1061_p1 = scmp.lt.u32.totalorder %s1054_s19, %s1659_s3 }
  0x2c   : > { %p1057_p12 = pnand %p1055_p9, %p1344_p13 }
  0x2e   : > { %p1058_p2 = pneg %p1057_p12 }
  0x30   : > { %p1063_p4 = pnand %p1061_p1, %p1058_p2 }
  0x32   : > { %1066 = shalt.err (!%p1063_p4)
}
  0x33   : > { %s1067_s11 = scalar_lea.vmem %s1332_s13, 128  ;;  %p1075_p3 = scmp.lt.s32.totalorder %s1332_s13, %s1332_s13 }
  0x34   : > { %p1068_p6 = scmp.ne.s32.totalorder %s1332_s13, %s1067_s11  ;;  %p1076_p5 = scmp.lt.s32.totalorder %s1067_s11, %s1067_s11 }
  0x36   : > { %p1070_p8 = pnand %p1068_p6, %p1344_p13  ;;  %p1077_p7 = por %p1076_p5, %p1075_p3 }
  0x38   : > { %p1071_p0 = pneg %p1070_p8 }
  0x3a   : > { %p1078_p10 = pnand %p1077_p7, %p1071_p0 }
  0x3c   : > { %1081 = shalt.err (!%p1078_p10)
}
  0x3d   : > { %942 = dma.hbm_to_vmem [thread:$0]  (!%p1328_p11), %s1659_s3, 128, %s1332_s13, [#allocation6]  }
  0x3e   : > { %s1082_s18 = scalar_lea.hbm %s1661_s5, 128 }
  0x3f   : > { %p1083_p9 = scmp.ne.s32.totalorder %s1661_s5, %s1082_s18  ;;  %p1089_p1 = scmp.lt.u32.totalorder %s1082_s18, %s1661_s5 }
  0x41   : > { %p1085_p12 = pnand %p1083_p9, %p1344_p13 }
  0x43   : > { %p1086_p2 = pneg %p1085_p12 }
  0x45   : > { %p1091_p4 = pnand %p1089_p1, %p1086_p2 }
  0x47   : > { %1094 = shalt.err (!%p1091_p4)
}
  0x48   : > { %s1095_s13 = scalar_lea.vmem %s1334_s16, 128  ;;  %p1103_p3 = scmp.lt.s32.totalorder %s1334_s16, %s1334_s16 }
  0x49   : > { %p1096_p6 = scmp.ne.s32.totalorder %s1334_s16, %s1095_s13  ;;  %p1104_p5 = scmp.lt.s32.totalorder %s1095_s13, %s1095_s13 }
  0x4b   : > { %p1098_p8 = pnand %p1096_p6, %p1344_p13  ;;  %p1105_p7 = por %p1104_p5, %p1103_p3 }
  0x4d   : > { %p1099_p0 = pneg %p1098_p8 }
  0x4f   : > { %p1106_p10 = pnand %p1105_p7, %p1099_p0 }
  0x51   : > { %1109 = shalt.err (!%p1106_p10)
}
  0x52   : > { %945 = dma.hbm_to_vmem [thread:$0]  (!%p1328_p11), %s1661_s5, 128, %s1334_s16, [#allocation9]  }
  0x53   : > { %s1407_s22 = sadd.s32 1, %s1214_s27   ;;  %s32_s10 = sadd.s32 1, %s1210_s26 }
  0x54   : > { %s29_s14 = ssub.s32 %s1214_s27, %s1407_s22  ;;  %p39_p9 = scmp.ne.s32.totalorder %s1210_s26, %s1206_s25 }
  0x55   : > { %p30_p13 = scmp.eq.s32.totalorder %s29_s14, 0  ;;  %p40_p12 = scmp.eq.s32.totalorder %s1214_s27, 0 }
  0x56   : > { %p957_p2 = scmp.lt.s32.totalorder %s1214_s27, 2  ;;  %p1672_p4 = scmp.eq.s32.totalorder %s1300_s28, 1 }
  0x57   : > { %s1417_s12 = scalar_select %p30_p13, %s1210_s26, %s32_s10  }
  0x58   : > { %p41_p1 = por %p40_p12, %p39_p9  ;;  %p1421_p6 = por %p1672_p4, %p39_p9 }
  0x59   : > { %s263_s17 = sand.u32 1, %s1210_s26   ;;  %s918_s18 = sshll.u32 %s1214_s27, 8 }
  0x5a   : > { %s895_s16 = sshll.u32 %s263_s17, 4  ;;  %s1430_s21 = scalar_lea.hbm %s1656_s0, %s918_s18 }
  0x5b   : > { %s267_s23 = scalar_lea.vmem [#allocation2], %s895_s16  ;;  %p1432_p11 = pnand %p957_p2, %p41_p1 }
  0x5c   : > { %s275_s13 = sshll.u32 %s267_s23, 4  ;;  %s264_s11 = scalar_lea.sflag [#allocation3], %s263_s17  ;;  %s1436_s13 = int_to_ptr.vmem [resolvable:$true] %s275_s13 }
  0x5d   : > { %s1110_s14 = scalar_lea.hbm %s1430_s21, 256  ;;  %p1112_p0 = pneg %p1432_p11 }
  0x5e   : > { %p1111_p8 = scmp.ne.s32.totalorder %s1430_s21, %s1110_s14  ;;  %s1115_s16 = scalar_lea.hbm %s1656_s0, 512 }
  0x5f   : > { %p1116_p7 = scmp.lt.u32.totalorder %s1430_s21, %s1656_s0  ;;  %p1117_p10 = scmp.lt.u32.totalorder %s1115_s16, %s1110_s14 }
  0x60   : > { %p1113_p3 = pnand %p1112_p0, %p1111_p8  ;;  %p1119_p9 = scmp.lt.u32.totalorder %s1110_s14, %s1430_s21 }
  0x61   : > { %p1118_p13 = por %p1117_p10, %p1116_p7 }
  0x62   : > { %p1114_p5 = pneg %p1113_p3 }
  0x63   : > { %p1120_p12 = por %p1119_p9, %p1118_p13 }
  0x65   : > { %p1121_p2 = pnand %p1120_p12, %p1114_p5 }
  0x67   : > { %1124 = shalt.err (!%p1121_p2)
}
  0x68   : > { %s1125_s17 = scalar_lea.vmem %s1436_s13, 256  ;;  %s1219_s23 = smov [#allocation2]  }
  0x69   : > { %p1126_p1 = scmp.ne.s32.totalorder %s1436_s13, %s1125_s17  ;;  %s1130_s10 = sshll.u32 %s1219_s23, 4  ;;  %s1131_s10 = int_to_ptr.vmem [resolvable:$false] %s1130_s10 }
  0x6a   : > { %s1132_s18 = scalar_lea.vmem %s1131_s10, 512  ;;  %p1133_p3 = scmp.lt.s32.totalorder %s1436_s13, %s1131_s10 }
  0x6b   : > { %p1128_p4 = pnand %p1126_p1, %p1112_p0  ;;  %p1134_p7 = scmp.lt.s32.totalorder %s1132_s18, %s1125_s17 }
  0x6d   : > { %p1129_p8 = pneg %p1128_p4  ;;  %p1135_p10 = por %p1134_p7, %p1133_p3 }
  0x6f   : > { %p1136_p13 = pnand %p1135_p10, %p1129_p8 }
  0x71   : > { %1139 = shalt.err (!%p1136_p13)
}
  0x72   : > { %949 = dma.hbm_to_vmem [thread:$0]  (!%p1432_p11), %s1430_s21, 256, %s1436_s13, %s264_s11  }
  0x73   : > { %p1675_p5 = scmp.ne.s32.totalorder %s1669_s9, 0 }
  0x74   : > { %s1466_s14 = sand.u32 (!%p1675_p5), 1, %s1206_s25   ;;  %p1676_p0 = scmp.ne.s32.totalorder (!%p1675_p5), %s1667_s30, 0 }
  0x75   : > { %284 = sbr.rel (%p1675_p5) target bundleno = 754 (0x2f2), region = 48  ;;  %s899_s16 = sshll.u32 (!%p1675_p5), %s1466_s14, 4 }
  0x76   : > { %s287_s19 = scalar_lea.sflag (!%p1675_p5), [#allocation3], %s1466_s14  ;;  %s290_s20 = scalar_lea.vmem (!%p1675_p5), [#allocation2], %s899_s16 }
  0x7c   : > { %1185 = dma.done.wait (%p1676_p0), %s287_s19, 256  }
  0x7d   : > { %1187 = vsyncadd (%p1676_p0), %s287_s19, 4294967040  ;;  %p1677_p11 = scmp.eq.s32.totalorder %s1300_s28, 0 }
  0x7f   : > { %1189 = dma.done.wait (%p1677_p11), [#allocation6], 256   ;;  %p1678_p9 = pmov %p1677_p11 }
  0x81   : > { %1191 = vsyncadd (%p1678_p9), [#allocation6], 4294967040  ;;  %p1679_p12 = pmov %p1678_p9 }
  0x82   : > { %p1680_p2 = pmov %p1678_p9 }
  0x83   : > { %1193 = dma.done.wait (%p1679_p12), [#allocation9], 128  }
  0x84   : > { %1195 = vsyncadd (%p1680_p2), [#allocation9], 4294967168  ;;  %v1220_v0 = vmov 0.0   ;;  %v1221_v1 = vmov 0   ;;  %v1484_v2 = vld [vmem:[%s290_s20 + $0x8] sm:$0xff]  ;;  %v1486_v3 = vld [vmem:[%s290_s20] sm:$0xff]  ;;  %v439_v32 = vlaneseq }
  0x85   : > { %410 = vmatprep.mubr.f32.mxu0 %v1220_v0  ;;  %1015 = vset.pattern.permute.xlu0 %v1221_v1  ;;  %v335_v4 = vld [vmem:[#allocation5] sm:$0xff]  ;;  %vm342_vm0 = vcmask 64512   ;;  %v417_v6 = vld [vmem:[#allocation7] sm:$0xff]  ;;  %v1222_v7 = vmov 4   ;;  %v1223_v8 = vmov 1   ;;  %v1224_v9 = vmov 3  }
  0x86   : > { %1017 = vset.pattern.permute.xlu1 %v1221_v1  ;;  %764 = vmatprep.mubr.f32.mxu1 %v1220_v0  ;;  %v336_v5 = vld [vmem:[%s1658_s2] sm:$0xff]  ;;  %v1225_v10 = vmov 2   ;;  %v1226_v11 = vmov 5   ;;  %v1227_v12 = vmov 6   ;;  %v1228_v13 = vmov 7   ;;  %s1230_s21 = smov 16  }
  0x87   : > { %346 = vmatprep.subr.mxu0 %v1484_v2  ;;  %339 = vperm.xlu0 %1015, %v336_v5   ;;  %v1229_v14 = vmov 8   ;;  %s1231_s13 = smov 17   ;;  %s1232_s29 = smov 15   ;;  %v691_v20 = vld [vmem:[%s1662_s6] sm:$0xff]  ;;  %v440_v35 = vshrl.u32 %v439_v32, 7  ;;  %vm432_vm1 = vcmask 138240  }
  0x88   : > { %347 = vmatpush1.msra.mxu0 %v1486_v3  ;;  %452 = vperm.xlu1 %1017, %v417_v6   ;;  %s1233_s11 = smov 1   ;;  %s1234_s17 = smov 127   ;;  %v437_v37 = vld [vmem:[%s1660_s4] ss:$8 sm:$0x3]  ;;  %vm464_vm2 = vcmask 130048  }
  0x89   : > { %904 = vmatmul.mubr.msk.f32.vlgmr.msra.gmra.mrb[0].mxu0 %vm342_vm0, %v335_v4  ;;  %s1235_s23 = smov 111   ;;  %s1236_s10 = smov 113   ;;  %v1534_v39 = vsub.s32 0, %v440_v35  ;;  %v1536_v40 = vsub.s32 1, %v440_v35  ;;  %vm497_vm3 = vcmask 121856   ;;  %vm530_vm4 = vcmask 7168  }
  0x8a   : > { %s1237_s18 = smov 112   ;;  %v905_v46 = vld [vmem:[%s1660_s4 + $0x1] ss:$8 sm:$0x3]  ;;  %vm562_vm5 = vcmask 1039360   ;;  %vm595_vm6 = vcmask 924672  }
  0x8b   : > { %1016 = vset.pattern.permute.xlu0 %v1222_v7  ;;  %v442_v41 = vrot.slane %v437_v37, %v1534_v39  ;;  %v446_v42 = vrot.slane %v437_v37, %v1536_v40  ;;  %v906_v47 = vld [vmem:[%s1660_s4 + $0x2] ss:$8 sm:$0x3]  ;;  %v475_v53 = vrot.slane %v905_v46, %v1534_v39  ;;  %v479_v54 = vrot.slane %v905_v46, %v1536_v40  ;;  %v907_v56 = vld [vmem:[%s1660_s4 + $0x3] ss:$8 sm:$0x3] }
  0x8c   : > { %420 = vperm.xlu0 %1016, %v417_v6   ;;  %1018 = vset.pattern.permute.xlu1 %v1223_v8  ;;  %v508_v55 = vrot.slane %v906_v47, %v1534_v39  ;;  %v512_v59 = vrot.slane %v906_v47, %v1536_v40  ;;  %v541_v5 = vrot.slane %v907_v56, %v1534_v39  ;;  %vm628_vm7 = vcmask 916480   ;;  %v910_v37 = vld [vmem:[%s1660_s4 + $0x7] ss:$8 sm:$0x3]  ;;  %s1238_s19 = smov [#allocation10]  }
  0x8d   : > { %485 = vperm.xlu1 %1018, %v417_v6   ;;  %v911_v47 = vld [vmem:[%s1660_s4 + $0x10] ss:$8 sm:$0x3]  ;;  %vm661_vm8 = vcmask 908288   ;;  %s1144_s20 = sshll.u32 %s1238_s19, 4  ;;  %s1145_s20 = int_to_ptr.vmem [resolvable:$false] %s1144_s20 }
  0x8e   : > { %s1146_s30 = scalar_lea.vmem %s1145_s20, 512 }
  0x90   : > { %1020 = vset.pattern.permute.xlu0 %v1224_v9 }
  0x91   : > { %551 = vperm.xlu0 %1020, %v417_v6   ;;  %1019 = vset.pattern.permute.xlu1 %v1225_v10 }
  0x92   : > { %518 = vperm.xlu1 %1019, %v417_v6  }
  0x95   : > { %1021 = vset.pattern.permute.xlu0 %v1226_v11 }
  0x96   : > { %584 = vperm.xlu0 %1021, %v417_v6  }
  0x9a   : > { %1022 = vset.pattern.permute.xlu0 %v1227_v12 }
  0x9b   : > { %617 = vperm.xlu0 %1022, %v417_v6  }
  0x9f   : > { %1023 = vset.pattern.permute.xlu0 %v1228_v13 }
  0xa0   : > { %650 = vperm.xlu0 %1023, %v417_v6  }
  0xa4   : > { %1024 = vset.pattern.permute.xlu0 %v1229_v14  ;;  %v909_v14 = vld [vmem:[%s1660_s4 + $0x6] ss:$8 sm:$0x3] }
  0xa5   : > { %v611_v32 = vrot.slane %v909_v14, %v1536_v40 }
 0x106   : > { %v340_v15 = vpop.permute.xlu0 %339 }
 0x107   : > { %v453_v21 = vpop.permute.xlu1 %452 }
 0x10b   : > { %v421_v23 = vpop.permute.xlu0 %420 }
 0x10c   : > { %v1517_v22 = vpop.permute.xlu1 %485 }
 0x110   : > { %v1521_v25 = vpop.permute.xlu0 %551 }
 0x111   : > { %v1519_v24 = vpop.permute.xlu1 %518 }
 0x115   : > { %v1523_v27 = vpop.permute.xlu0 %584 }
 0x11a   : > { %v1525_v30 = vpop.permute.xlu0 %617 }
 0x11f   : > { %v1527_v33 = vpop.permute.xlu0 %650 }
 0x15c   : > { %v412_v16 = vpop.f32.mrb[0].mxu0 }
 0x15d   : > { %v1494_v17 = vadd.f32 %v412_v16, %v340_v15  ;;  %v414_v18 = vpop.f32.mrb[1].mxu0 }
 0x15e   : > { %v1498_v19 = vadd.f32 %v414_v18, %v340_v15 }
 0x15f   : > { %462 = vrot.lane.b32.xlu1 %v1494_v17, %s1230_s21  ;;  %430 = vrot.lane.b32.xlu0 %v1494_v17, %s1231_s13  ;;  %v423_v52 = vmul.f32 %v421_v23, %v1494_v17 }
 0x160   : > { %v424_v4 = vmul.f32 %v421_v23, %v1498_v19 }
 0x163   : > { %495 = vrot.lane.b32.xlu1 %v1494_v17, %s1232_s29  ;;  %459 = vrot.lane.b32.xlu0 %v1498_v19, %s1230_s21 }
 0x167   : > { %528 = vrot.lane.b32.xlu1 %v1494_v17, %s1233_s11  ;;  %683 = vperm.xlu0 %1024, %v417_v6   ;;  %v545_v6 = vrot.slane %v907_v56, %v1536_v40 }
 0x16b   : > { %558 = vrot.lane.b32.xlu1 %v1494_v17, %s1234_s17  ;;  %657 = vrot.lane.b32.xlu0 %v1494_v17, %s1235_s23 }
 0x16c   : > { %1025 = vset.pattern.permute.xlu0 %v1221_v1  ;;  %v908_v1 = vld [vmem:[%s1660_s4 + $0x5] ss:$8 sm:$0x3] }
 0x16d   : > { %v574_v13 = vrot.slane %v908_v1, %v1534_v39 }
 0x16f   : > { %591 = vrot.lane.b32.xlu1 %v1494_v17, %s1236_s10  ;;  %694 = vperm.xlu0 %1025, %v691_v20  }
 0x173   : > { %426 = vrot.lane.b32.xlu1 %v1498_v19, %s1231_s13 }
 0x177   : > { %624 = vrot.lane.b32.xlu1 %v1494_v17, %s1237_s18  ;;  %v578_v17 = vrot.slane %v908_v1, %v1536_v40 }
 0x17b   : > { %492 = vrot.lane.b32.xlu1 %v1498_v19, %s1232_s29  ;;  %s919_s29 = sshll.u32 %s1300_s28, 8  ;;  %s776_s28 = scalar_lea.sflag [#allocation4], %s1466_s14 }
 0x17f   : > { %525 = vrot.lane.b32.xlu1 %v1498_v19, %s1233_s11  ;;  %s332_s11 = scalar_lea.vmem [#allocation10], %s899_s16 }
 0x183   : > { %560 = vrot.lane.b32.xlu1 %v1498_v19, %s1234_s17  ;;  %s790_s17 = sshll.u32 %s332_s11, 4  ;;  %s1614_s17 = int_to_ptr.vmem [resolvable:$true] %s790_s17 }
 0x184   : > { %s1140_s16 = scalar_lea.vmem %s1614_s17, 256  ;;  %p1147_p3 = scmp.lt.s32.totalorder %s1614_s17, %s1145_s20 }
 0x185   : > { %p1141_p1 = scmp.ne.s32.totalorder %s1614_s17, %s1140_s16  ;;  %p1148_p7 = scmp.lt.s32.totalorder %s1146_s30, %s1140_s16 }
 0x187   : > { %593 = vrot.lane.b32.xlu1 %v1498_v19, %s1236_s10  ;;  %p1142_p4 = pnand %p1141_p1, %p1421_p6  ;;  %p1149_p10 = por %p1148_p7, %p1147_p3 }
 0x189   : > { %p1143_p8 = pneg %p1142_p4 }
 0x18b   : > { %626 = vrot.lane.b32.xlu1 %v1498_v19, %s1237_s18  ;;  %s1612_s18 = scalar_lea.hbm %s1663_s7, %s919_s29  ;;  %p1150_p13 = pnand %p1149_p10, %p1143_p8 }
 0x18f   : > { %659 = vrot.lane.b32.xlu1 %v1498_v19, %s1235_s23 }
 0x1d1   : > { %v463_v26 = vpop.permute.xlu1 %462  ;;  %v431_v38 = vpop.permute.xlu0 %430 }
 0x1d5   : > { %v496_v28 = vpop.permute.xlu1 %495  ;;  %v460_v48 = vpop.permute.xlu0 %459 }
 0x1d6   : > { %v465_v57 = vsel %vm464_vm2, %v463_v26, %v460_v48  ;;  %v468_v58 = vsel %vm464_vm2, %v460_v48, %v463_v26 }
 0x1d7   : > { %v482_v7 = vmul.f32 %v475_v53, %v468_v58  ;;  %v483_v8 = vmul.f32 %v479_v54, %v465_v57  ;;  %v677_v57 = vrot.slane %v911_v47, %v1536_v40 }
 0x1d9   : > { %v529_v29 = vpop.permute.xlu1 %528  ;;  %v488_v26 = vmul.f32 %v1517_v22, %v482_v7 }
 0x1dd   : > { %v559_v31 = vpop.permute.xlu1 %558 }
 0x1e1   : > { %v1529_v34 = vpop.permute.xlu1 %591 }
 0x1e5   : > { %v427_v36 = vpop.permute.xlu1 %426 }
 0x1e6   : > { %v433_v44 = vsel %vm432_vm1, %v431_v38, %v427_v36  ;;  %v436_v45 = vsel %vm432_vm1, %v427_v36, %v431_v38  ;;  %v684_v48 = vpop.permute.xlu0 %683 }
 0x1e7   : > { %v449_v49 = vmul.f32 %v442_v41, %v436_v45  ;;  %v450_v50 = vmul.f32 %v446_v42, %v433_v44 }
 0x1e9   : > { %v1540_v43 = vpop.permute.xlu1 %624  ;;  %v455_v60 = vmul.f32 %v453_v21, %v449_v49  ;;  %v456_v61 = vmul.f32 %v453_v21, %v450_v50 }
 0x1eb   : > { %v457_v15 = vadd.f32 %v455_v60, %v423_v52  ;;  %v458_v16 = vadd.f32 %v456_v61, %v424_v4  ;;  %v644_v52 = vrot.slane %v910_v37, %v1536_v40 }
 0x1ed   : > { %v493_v51 = vpop.permute.xlu1 %492  ;;  %v490_v38 = vadd.f32 %v488_v26, %v457_v15 }
 0x1ee   : > { %v498_v62 = vsel %vm497_vm3, %v496_v28, %v493_v51  ;;  %v501_v63 = vsel %vm497_vm3, %v493_v51, %v496_v28  ;;  %v489_v28 = vmul.f32 %v1517_v22, %v483_v8  ;;  %v640_v51 = vrot.slane %v910_v37, %v1534_v39 }
 0x1ef   : > { %v515_v11 = vmul.f32 %v508_v55, %v501_v63  ;;  %v516_v12 = vmul.f32 %v512_v59, %v498_v62 }
 0x1f0   : > { %v491_v41 = vadd.f32 %v489_v28, %v458_v16 }
 0x1f1   : > { %v526_v0 = vpop.permute.xlu1 %525  ;;  %v521_v35 = vmul.f32 %v1519_v24, %v515_v11  ;;  %v522_v36 = vmul.f32 %v1519_v24, %v516_v12 }
 0x1f2   : > { %v531_v9 = vsel %vm530_vm4, %v529_v29, %v526_v0  ;;  %v534_v10 = vsel %vm530_vm4, %v526_v0, %v529_v29  ;;  %v607_v29 = vrot.slane %v909_v14, %v1534_v39 }
 0x1f3   : > { %v548_v19 = vmul.f32 %v541_v5, %v534_v10  ;;  %v549_v20 = vmul.f32 %v545_v6, %v531_v9  ;;  %v523_v53 = vadd.f32 %v521_v35, %v490_v38  ;;  %v524_v54 = vadd.f32 %v522_v36, %v491_v41 }
 0x1f5   : > { %v561_v18 = vpop.permute.xlu1 %560  ;;  %v554_v22 = vmul.f32 %v1521_v25, %v548_v19  ;;  %v555_v45 = vmul.f32 %v1521_v25, %v549_v20 }
 0x1f6   : > { %v563_v21 = vsel %vm562_vm5, %v559_v31, %v561_v18  ;;  %v567_v23 = vsel %vm562_vm5, %v561_v18, %v559_v31 }
 0x1f7   : > { %v581_v31 = vmul.f32 %v574_v13, %v563_v21  ;;  %v582_v42 = vmul.f32 %v578_v17, %v567_v23  ;;  %v556_v58 = vadd.f32 %v554_v22, %v523_v53  ;;  %v557_v59 = vadd.f32 %v555_v45, %v524_v54  ;;  %v690_v17 = vld [vmem:[#allocation8] sm:$0xff] }
 0x1f9   : > { %v594_v44 = vpop.permute.xlu1 %593  ;;  %v587_v25 = vmul.f32 %v1523_v27, %v581_v31  ;;  %v588_v55 = vmul.f32 %v1523_v27, %v582_v42  ;;  %v658_v27 = vpop.permute.xlu0 %657 }
 0x1fa   : > { %v596_v46 = vsel %vm595_vm6, %v1529_v34, %v594_v44  ;;  %v600_v24 = vsel %vm595_vm6, %v594_v44, %v1529_v34  ;;  %v673_v34 = vrot.slane %v911_v47, %v1534_v39 }
 0x1fb   : > { %v614_v49 = vmul.f32 %v607_v29, %v596_v46  ;;  %v615_v50 = vmul.f32 %v611_v32, %v600_v24  ;;  %v589_v4 = vadd.f32 %v587_v25, %v556_v58  ;;  %v590_v40 = vadd.f32 %v588_v55, %v557_v59 }
 0x1fd   : > { %v627_v56 = vpop.permute.xlu1 %626  ;;  %v620_v62 = vmul.f32 %v1525_v30, %v614_v49  ;;  %v621_v63 = vmul.f32 %v1525_v30, %v615_v50 }
 0x1fe   : > { %v629_v60 = vsel %vm628_vm7, %v1540_v43, %v627_v56  ;;  %v633_v61 = vsel %vm628_vm7, %v627_v56, %v1540_v43 }
 0x1ff   : > { %v647_v0 = vmul.f32 %v640_v51, %v629_v60  ;;  %v648_v1 = vmul.f32 %v644_v52, %v633_v61  ;;  %v623_v10 = vadd.f32 %v621_v63, %v590_v40  ;;  %v622_v11 = vadd.f32 %v620_v62, %v589_v4 }
 0x201   : > { %v653_v39 = vmul.f32 %v1527_v33, %v647_v0  ;;  %v660_v5 = vpop.permute.xlu1 %659  ;;  %v654_v6 = vmul.f32 %v1527_v33, %v648_v1  ;;  %v695_v33 = vpop.permute.xlu0 %694 }
 0x202   : > { %v662_v7 = vsel %vm661_vm8, %v658_v27, %v660_v5  ;;  %v666_v8 = vsel %vm661_vm8, %v660_v5, %v658_v27 }
 0x203   : > { %v680_v9 = vmul.f32 %v673_v34, %v662_v7  ;;  %v681_v43 = vmul.f32 %v677_v57, %v666_v8  ;;  %v656_v30 = vadd.f32 %v654_v6, %v623_v10  ;;  %v655_v13 = vadd.f32 %v653_v39, %v622_v11 }
 0x205   : > { %v687_v12 = vmul.f32 %v684_v48, %v681_v43  ;;  %v686_v14 = vmul.f32 %v684_v48, %v680_v9 }
 0x207   : > { %v689_v15 = vadd.f32 %v687_v12, %v656_v30  ;;  %v688_v16 = vadd.f32 %v686_v14, %v655_v13 }
 0x209   : > { %700 = vmatprep.subr.mxu1 %v689_v15 }
 0x20a   : > { %701 = vmatpush1.msra.mxu1 %v688_v16 }
 0x20b   : > { %912 = vmatmul.mubr.msk.f32.vlgmr.msra.gmra.mrb[0].mxu1 %vm342_vm0, %v690_v17 }
 0x2de   : > { %v766_v18 = vpop.f32.mrb[0].mxu1 }
 0x2df   : > { %v767_v19 = vadd.f32 %v766_v18, %v695_v33  ;;  %v768_v20 = vpop.f32.mrb[1].mxu1 }
 0x2e0   : > { %v769_v21 = vadd.f32 %v768_v20, %v695_v33 }
 0x2e1   : > { %v771_v23 = vadd.f32 %v767_v19, %v1486_v3 }
 0x2e2   : > { %v772_v26 = vadd.f32 %v769_v21, %v1484_v2 }
 0x2e3   : > { %773 = vst [vmem:[%s332_s11] sm:$0xff] %v771_v23 }
 0x2e4   : > { %774 = vst [vmem:[%s332_s11 + $0x8] sm:$0xff] %v772_v26 }
 0x2e5   : > { %1153 = shalt.err (!%p1150_p13)
}
 0x2e6   : > { %s1154_s14 = scalar_lea.hbm %s1612_s18, 256  ;;  %s1158_s13 = scalar_lea.hbm %s1663_s7, 512 }
 0x2e7   : > { %p1155_p5 = scmp.ne.s32.totalorder %s1612_s18, %s1154_s14  ;;  %p1159_p9 = scmp.lt.u32.totalorder %s1612_s18, %s1663_s7 }
 0x2e8   : > { %p1160_p12 = scmp.lt.u32.totalorder %s1158_s13, %s1154_s14  ;;  %p1162_p1 = scmp.lt.u32.totalorder %s1154_s14, %s1612_s18 }
 0x2e9   : > { %p1156_p0 = pnand %p1155_p5, %p1421_p6 }
 0x2ea   : > { %p1161_p2 = por %p1160_p12, %p1159_p9 }
 0x2eb   : > { %p1157_p11 = pneg %p1156_p0 }
 0x2ec   : > { %p1163_p4 = por %p1162_p1, %p1161_p2 }
 0x2ee   : > { %p1164_p8 = pnand %p1163_p4, %p1157_p11 }
 0x2f0   : > { %1167 = shalt.err (!%p1164_p8)
}
 0x2f1   : > { %934 = dma.vmem_to_hbm [thread:$0]  (%p1421_p6), %s1614_s17, 256, %s1612_s18, %s776_s28  }
 0x2f2 PF: > { %s802_s23 = sand.u32 1, %s1202_s24   ;;  %p1681_p3 = scmp.ne.s32.totalorder %s1668_s8, 0 }
 0x2f3   : > { %p1682_p7 = scmp.ge.s32.totalorder %s1214_s27, 2  ;;  %s803_s10 = scalar_lea.sflag [#allocation4], %s802_s23 }
 0x2f5   : > { %p951_p10 = pnand %p1682_p7, %p1681_p3 }
 0x2f7   : > { %1197 = dma.done.wait (!%p951_p10), %s803_s10, 256  }
 0x2f8   : > { %1199 = vsyncadd (!%p951_p10), %s803_s10, 4294967040  ;;  %p22_p13 = scmp.ge.s32.totalorder %s1407_s22, 4   ;;  %s1683_s24 = smov %s1206_s25 }
 0x2f9   : > { %s1684_s25 = smov %s1210_s26  ;;  %s1685_s26 = smov %s1417_s12 }
 0x2fa   : > { %s1686_s27 = smov %s1407_s22  ;;  %24 = sbr.rel (!%p22_p13) target bundleno = 7 (0x7), region = 112 }
 0x301   :  { %808 = vsyncpa [#allocation3], 1 }
 0x302   :  { %810 = vsyncpa [#allocation3 + $0x1], 1 }
 0x303   :  { %811 = vsyncpa [#allocation6], 1 }
 0x304   :  { %812 = vsyncpa [#allocation9], 1 }
 0x305   :  { %813 = vsyncpa [#allocation4], 1 }
 0x306   :  { %815 = vsyncpa [#allocation4 + $0x1], 1 }

</bundles_post_ra>
